<compile_context>
chip_gen: v7x
topology: tpu7x:2x2x1
jax: 0.10.0
libtpu: 0.0.40
codegen_flags: <defaults>
</compile_context>

<pallas_src>
import jax
import jax.numpy as jnp
from jax import lax
from jax.experimental import pallas as pl
from jax.experimental.pallas import tpu as pltpu

EMB_DIM = 32
NUM_EXPERTS = 8
TOP_K = 2
LOAD_COEFF = 0.1
Z_ROUTER_COEFF = 0.001
# scaling_factor == "auto" -> 1 / top_k  =>  hidden = int(4 * emb_dim / top_k)
HIDDEN = int(4 * EMB_DIM * (1.0 / TOP_K))


def _gelu_tanh(x):
    # GPT-2 style tanh-approximation GELU (the custom GELU module in llm_quest).
    return 0.5 * x * (1.0 + jnp.tanh(
        jnp.sqrt(2.0 / jnp.pi).astype(x.dtype) * (x + 0.044715 * x * x * x)))


def moe_kernel(x_ref, logits_ref, w1_ref, b1_ref, w2_ref, b2_ref,
               out_ref, gw_ref):
    """One grid step = one token tile.

    Routing (softmax + top-k + renorm) is computed in-kernel from the gate
    logits; all expert FFNs are fused into two lane-full GEMMs over the
    flattened (E*H) hidden axis, with per-expert gating applied by scaling the
    corresponding H-wide column block of the hidden activations.  Tokens not
    routed to an expert get gate weight exactly 0, so their contribution is
    exactly 0 (matches the masked scatter-add in the PyTorch per-expert loop).
    Exact top-k probability ties (measure zero for continuous inputs) may
    select more than top_k experts; the weights still renormalize to 1.
    """
    E = b2_ref.shape[0]
    EH = w1_ref.shape[1]
    H = EH // E

    x = x_ref[...]                               # (tT, D)  f32
    logits = logits_ref[...]                     # (tT, E)  f32

    # ---- routing: softmax over E lanes, top-k mask, renormalize (all f32) ----
    m = jnp.max(logits, axis=-1, keepdims=True)
    e_l = jnp.exp(logits - m)
    probs = e_l / jnp.sum(e_l, axis=-1, keepdims=True)

    masked = probs
    keep = None
    for _ in range(TOP_K):                       # static unroll (TOP_K == 2)
        mk = jnp.max(masked, axis=-1, keepdims=True)
        sk = masked >= mk
        keep = sk if keep is None else (keep | sk)
        masked = jnp.where(sk, -1.0, masked)
    gw = jnp.where(keep, probs, 0.0)                          # (tT, E)
    gw = gw / jnp.sum(gw, axis=-1, keepdims=True)             # renorm top-k
    gw_ref[...] = gw.astype(gw_ref.dtype)

    # ---- expert FFNs, fused over all experts (bf16 MXU, f32 accumulate) ----
    h = jnp.dot(x.astype(jnp.bfloat16), w1_ref[...],
                preferred_element_type=jnp.float32)           # (tT, E*H)
    h = _gelu_tanh(h + b1_ref[...])                           # bias + GELU, f32

    # Broadcast gate weights (tT, E) -> (tT, E*H): column block e repeats
    # gw[:, e] H times.  Done once via a tiny MXU matmul against a 0/1
    # selection matrix built from iota (avoids lane-reshape relayouts and
    # per-expert broadcasts; only one (tT, E*H) temporary chain stays live).
    row = lax.broadcasted_iota(jnp.int32, (E, EH), 0)
    col = lax.broadcasted_iota(jnp.int32, (E, EH), 1)
    sel = ((col >= row * H) & (col < (row + 1) * H)).astype(jnp.float32)
    gwb = jnp.dot(gw, sel, preferred_element_type=jnp.float32)  # (tT, E*H)

    hg = (h * gwb).astype(jnp.bfloat16)
    y = jnp.dot(hg, w2_ref[...], preferred_element_type=jnp.float32)  # (tT, D)
    # Gate-weighted second bias: sum_e gw[:, e] * b2[e, :]  (must stay gated to
    # match the PyTorch per-expert loop, which gates after adding b2).
    y = y + jnp.dot(gw, b2_ref[...], preferred_element_type=jnp.float32)

    out_ref[...] = y.astype(out_ref.dtype)


def _pick_token_tile(T, D, E, H, vmem_budget=12 * 1024 * 1024):
    """Largest token tile that (a) divides T, (b) keeps streamed blocks +
    resident weights + live (tile, E*H) f32 temporaries under a conservative
    VMEM budget (safe under every generation's default scoped VMEM, including
    v7x), and (c) leaves >= 2 grid steps when possible so the "parallel" token
    axis can shard across both v7x TensorCores."""
    def fits(t):
        streamed = 2 * 2 * t * 4 * (D + E)                   # x+logits in, out+gw out (dbl-buf, f32)
        resident = 2 * 2 * (D * E * H) * 2 + 4 * E * H + 4 * E * D  # bf16 W1f/W2f (x2 buf) + biases
        temps = 4 * t * E * H * 4                            # a few live (t, E*H) f32 temporaries
        return streamed + resident + temps <= vmem_budget

    cands = [t for t in (1024, 512, 256, 128, 64, 32, 16, 8)
             if T % t == 0 and fits(t)]
    for t in cands:                                          # prefer >= 2 steps, tile >= 256
        if t >= 256 and T // t >= 2:
            return t
    return cands[0] if cands else T


def moe_experts_pallas(x_tok, gate_logits, w1, b1, w2, b2):
    T, D = x_tok.shape
    E, _, H = w1.shape
    EH = E * H

    # Fuse stacked expert weights into two big GEMM operands (once per call,
    # tiny) and cast matmul operands to bf16; biases stay f32.
    w1f = jnp.transpose(w1, (1, 0, 2)).reshape(D, EH).astype(jnp.bfloat16)
    w2f = w2.reshape(EH, D).astype(jnp.bfloat16)
    b1f = b1.reshape(1, EH).astype(jnp.float32)
    b2f = b2.astype(jnp.float32)

    tT = _pick_token_tile(T, D, E, H)
    grid = (T // tT,)

    out, gw = pl.pallas_call(
        moe_kernel,
        out_shape=(jax.ShapeDtypeStruct((T, D), x_tok.dtype),
                   jax.ShapeDtypeStruct((T, E), jnp.float32)),
        grid_spec=pltpu.PrefetchScalarGridSpec(
            num_scalar_prefetch=0,
            grid=grid,
            in_specs=[
                pl.BlockSpec((tT, D), lambda i: (i, 0)),    # x tile
                pl.BlockSpec((tT, E), lambda i: (i, 0)),    # gate logits tile
                pl.BlockSpec((D, EH), lambda i: (0, 0)),    # fused W1 (resident)
                pl.BlockSpec((1, EH), lambda i: (0, 0)),    # fused b1 (resident)
                pl.BlockSpec((EH, D), lambda i: (0, 0)),    # fused W2 (resident)
                pl.BlockSpec((E, D), lambda i: (0, 0)),     # b2 (resident)
            ],
            out_specs=(
                pl.BlockSpec((tT, D), lambda i: (i, 0)),    # combined expert output
                pl.BlockSpec((tT, E), lambda i: (i, 0)),    # dense gate weights
            ),
        ),
        compiler_params=pltpu.CompilerParams(
            dimension_semantics=("parallel",)),
    )(x_tok, gate_logits, w1f, b1f, w2f, b2f)
    return out, gw


def moe_forward(x, params):
    b, s, d = x.shape
    T = b * s
    x_tok = x.reshape(T, d)

    # --- gate logits (shared by the kernel's routing and the aux losses) ---
    logits = x_tok @ params["gate_w"].T + params["gate_b"]            # (T, E)

    # --- auxiliary MoE losses (full-batch statistics, plain JAX glue) ---
    probs = jax.nn.softmax(logits, axis=-1)
    _, topk_i = jax.lax.top_k(probs, TOP_K)
    z_router_loss = jnp.mean(jax.nn.logsumexp(logits, axis=-1) ** 2)
    counts = jnp.sum(jax.nn.one_hot(topk_i, NUM_EXPERTS, dtype=x.dtype),
                     axis=(0, 1))                                     # bincount
    f_i = counts / (TOP_K * T)
    p_i = jnp.mean(probs, axis=0)
    load_loss = NUM_EXPERTS * jnp.dot(f_i, p_i)
    moe_loss = Z_ROUTER_COEFF * z_router_loss + LOAD_COEFF * load_loss

    # --- routing + expert FFNs + weighted combine (Pallas hot path) ---
    out, gate_weights = moe_experts_pallas(
        x_tok, logits, params["w1"], params["b1"], params["w2"], params["b2"])
    return out.reshape(b, s, d), moe_loss, gate_weights


def reference_experts(x_tok, params, gate_weights):
    """Pure-JAX f32 dense reference of the PyTorch per-expert loop."""
    out = jnp.zeros_like(x_tok)
    for e in range(NUM_EXPERTS):
        h = _gelu_tanh(x_tok @ params["w1"][e] + params["b1"][e])
        y = h @ params["w2"][e] + params["b2"][e]
        out = out + y * gate_weights[:, e:e + 1]
    return out


def init_params(key):
    ks = jax.random.split(key, 6)
    scale = 0.02
    return {
        "gate_w": scale * jax.random.normal(ks[0], (NUM_EXPERTS, EMB_DIM), jnp.float32),
        "gate_b": scale * jax.random.normal(ks[1], (NUM_EXPERTS,), jnp.float32),
        "w1": scale * jax.random.normal(ks[2], (NUM_EXPERTS, EMB_DIM, HIDDEN), jnp.float32),
        "b1": scale * jax.random.normal(ks[3], (NUM_EXPERTS, HIDDEN), jnp.float32),
        "w2": scale * jax.random.normal(ks[4], (NUM_EXPERTS, HIDDEN, EMB_DIM), jnp.float32),
        "b2": scale * jax.random.normal(ks[5], (NUM_EXPERTS, EMB_DIM), jnp.float32),
    }


if __name__ == "__main__":
    key = jax.random.PRNGKey(0)
    k_x, k_p = jax.random.split(key)
    b, s = 2, 8
    x = jax.random.normal(k_x, (b, s, EMB_DIM), jnp.float32)
    params = init_params(k_p)

    out, moe_loss, gate_weights = jax.jit(moe_forward)(x, params)
    out = jax.block_until_ready(out)
    moe_loss = jax.block_until_ready(moe_loss)
    gate_weights = jax.block_until_ready(gate_weights)

    x_tok = x.reshape(b * s, EMB_DIM)
    # Reference uses the kernel-emitted gate weights, so the comparison only
    # exercises the fused bf16 FFN math (tolerance loosened for bf16 operands).
    ref = reference_experts(x_tok, params, gate_weights)
    assert jnp.allclose(out.reshape(b * s, EMB_DIM), ref, atol=3e-3, rtol=3e-2), \
        "Pallas MoE output mismatch vs reference"
    assert jnp.allclose(jnp.sum(gate_weights, axis=-1), 1.0, atol=1e-5), \
        "gate weights do not renormalize to 1"
    assert jnp.isfinite(moe_loss)

    print("KERNEL_OK")
</pallas_src>

<mosaic_0001>
module attributes {stable_mosaic.version = 11 : i64} {
  func.func @moe_kernel(%arg0: i32, %arg1: memref<16x32xf32, #tpu.memory_space<vmem>>, %arg2: memref<16x8xf32, #tpu.memory_space<vmem>>, %arg3: memref<32x512xbf16, #tpu.memory_space<vmem>>, %arg4: memref<1x512xf32, #tpu.memory_space<vmem>>, %arg5: memref<512x32xbf16, #tpu.memory_space<vmem>>, %arg6: memref<8x32xf32, #tpu.memory_space<vmem>>, %arg7: memref<16x32xf32, #tpu.memory_space<vmem>>, %arg8: memref<16x8xf32, #tpu.memory_space<vmem>>) attributes {dimension_semantics = [#tpu.dimension_semantics<parallel>], iteration_bounds = array<i64: 1>, scalar_prefetch = 0 : i64, scratch_operands = 0 : i64, tpu.core_type = #tpu.core_type<tc>, window_params = [{transform_indices = @transform_0, window_bounds = array<i64: 16, 32>}, {transform_indices = @transform_1, window_bounds = array<i64: 16, 8>}, {pipeline_mode = #tpu.pipeline_mode<synchronous>, transform_indices = @transform_2, window_bounds = array<i64: 32, 512>}, {pipeline_mode = #tpu.pipeline_mode<synchronous>, transform_indices = @transform_3, window_bounds = array<i64: 1, 512>}, {pipeline_mode = #tpu.pipeline_mode<synchronous>, transform_indices = @transform_4, window_bounds = array<i64: 512, 32>}, {pipeline_mode = #tpu.pipeline_mode<synchronous>, transform_indices = @transform_5, window_bounds = array<i64: 8, 32>}, {transform_indices = @transform_6, window_bounds = array<i64: 16, 32>}, {transform_indices = @transform_7, window_bounds = array<i64: 16, 8>}]} {
    %c0 = arith.constant 0 : index
    %c0_0 = arith.constant 0 : index
    %0 = vector.load %arg1[%c0, %c0_0] : memref<16x32xf32, #tpu.memory_space<vmem>>, vector<16x32xf32>
    %c0_1 = arith.constant 0 : index
    %c0_2 = arith.constant 0 : index
    %1 = vector.load %arg2[%c0_1, %c0_2] : memref<16x8xf32, #tpu.memory_space<vmem>>, vector<16x8xf32>
    %cst = arith.constant dense<0xFF800000> : vector<16xf32>
    %2 = vector.multi_reduction <maximumf>, %1, %cst [1] : vector<16x8xf32> to vector<16xf32>
    %3 = vector.shape_cast %2 : vector<16xf32> to vector<16x1xf32>
    %4 = vector.broadcast %3 : vector<16x1xf32> to vector<16x8xf32>
    %5 = arith.subf %1, %4 : vector<16x8xf32>
    %6 = math.exp %5 : vector<16x8xf32>
    %cst_3 = arith.constant dense<0.000000e+00> : vector<16xf32>
    %7 = vector.multi_reduction <add>, %6, %cst_3 [1] : vector<16x8xf32> to vector<16xf32>
    %8 = vector.shape_cast %7 : vector<16xf32> to vector<16x1xf32>
    %9 = vector.broadcast %8 : vector<16x1xf32> to vector<16x8xf32>
    %10 = arith.divf %6, %9 : vector<16x8xf32>
    %cst_4 = arith.constant dense<0xFF800000> : vector<16xf32>
    %11 = vector.multi_reduction <maximumf>, %10, %cst_4 [1] : vector<16x8xf32> to vector<16xf32>
    %12 = vector.shape_cast %11 : vector<16xf32> to vector<16x1xf32>
    %13 = vector.broadcast %12 : vector<16x1xf32> to vector<16x8xf32>
    %14 = arith.cmpf oge, %10, %13 : vector<16x8xf32>
    %cst_5 = arith.constant -1.000000e+00 : f32
    %15 = vector.broadcast %cst_5 : f32 to vector<16x8xf32>
    %16 = arith.select %14, %15, %10 : vector<16x8xi1>, vector<16x8xf32>
    %cst_6 = arith.constant dense<0xFF800000> : vector<16xf32>
    %17 = vector.multi_reduction <maximumf>, %16, %cst_6 [1] : vector<16x8xf32> to vector<16xf32>
    %18 = vector.shape_cast %17 : vector<16xf32> to vector<16x1xf32>
    %19 = vector.broadcast %18 : vector<16x1xf32> to vector<16x8xf32>
    %20 = arith.cmpf oge, %16, %19 : vector<16x8xf32>
    %21 = arith.ori %14, %20 : vector<16x8xi1>
    %cst_7 = arith.constant 0.000000e+00 : f32
    %22 = vector.broadcast %cst_7 : f32 to vector<16x8xf32>
    %23 = arith.select %21, %10, %22 : vector<16x8xi1>, vector<16x8xf32>
    %cst_8 = arith.constant dense<0.000000e+00> : vector<16xf32>
    %24 = vector.multi_reduction <add>, %23, %cst_8 [1] : vector<16x8xf32> to vector<16xf32>
    %25 = vector.shape_cast %24 : vector<16xf32> to vector<16x1xf32>
    %26 = vector.broadcast %25 : vector<16x1xf32> to vector<16x8xf32>
    %27 = arith.divf %23, %26 : vector<16x8xf32>
    %c0_9 = arith.constant 0 : index
    %c0_10 = arith.constant 0 : index
    %28 = vector.load %arg8[%c0_9, %c0_10] : memref<16x8xf32, #tpu.memory_space<vmem>>, vector<16x8xf32>
    tpu.vector_store %arg8[%c0_9, %c0_10], %27 {strides = array<i32>} : memref<16x8xf32, #tpu.memory_space<vmem>>, vector<16x8xf32>,
    %29 = arith.truncf %0 : vector<16x32xf32> to vector<16x32xbf16>
    %c0_11 = arith.constant 0 : index
    %c0_12 = arith.constant 0 : index
    %30 = vector.load %arg3[%c0_11, %c0_12] : memref<32x512xbf16, #tpu.memory_space<vmem>>, vector<32x512xbf16>
    %cst_13 = arith.constant dense<0.000000e+00> : vector<16x512xf32>
    %31 = tpu.matmul %29, %30, %cst_13 {dimension_numbers = #tpu.dot_dimension_numbers<[1], [0], [0], [1], [0, 0, 1, 1], [], []>} : vector<16x32xbf16>, vector<32x512xbf16>, vector<16x512xf32> -> vector<16x512xf32>
    %c0_14 = arith.constant 0 : index
    %c0_15 = arith.constant 0 : index
    %32 = vector.load %arg4[%c0_14, %c0_15] : memref<1x512xf32, #tpu.memory_space<vmem>>, vector<1x512xf32>
    %33 = vector.broadcast %32 : vector<1x512xf32> to vector<16x512xf32>
    %34 = arith.addf %31, %33 : vector<16x512xf32>
    %cst_16 = arith.constant 5.000000e-01 : f32
    %35 = vector.broadcast %cst_16 : f32 to vector<16x512xf32>
    %36 = arith.mulf %35, %34 : vector<16x512xf32>
    %cst_17 = arith.constant 0.636619746 : f32
    %37 = math.sqrt %cst_17 : f32
    %cst_18 = arith.constant 4.471500e-02 : f32
    %38 = vector.broadcast %cst_18 : f32 to vector<16x512xf32>
    %39 = arith.mulf %38, %34 : vector<16x512xf32>
    %40 = arith.mulf %39, %34 : vector<16x512xf32>
    %41 = arith.mulf %40, %34 : vector<16x512xf32>
    %42 = arith.addf %34, %41 : vector<16x512xf32>
    %43 = vector.broadcast %37 : f32 to vector<16x512xf32>
    %44 = arith.mulf %43, %42 : vector<16x512xf32>
    %45 = math.tanh %44 : vector<16x512xf32>
    %cst_19 = arith.constant 1.000000e+00 : f32
    %46 = vector.broadcast %cst_19 : f32 to vector<16x512xf32>
    %47 = arith.addf %46, %45 : vector<16x512xf32>
    %48 = arith.mulf %36, %47 : vector<16x512xf32>
    %49 = tpu.iota {dimensions = array<i32: 0>} : vector<8x512xi32>
    %50 = tpu.iota {dimensions = array<i32: 1>} : vector<8x512xi32>
    %c64_i32 = arith.constant 64 : i32
    %51 = vector.broadcast %c64_i32 : i32 to vector<8x512xi32>
    %52 = arith.muli %49, %51 : vector<8x512xi32>
    %53 = arith.cmpi sge, %50, %52 : vector<8x512xi32>
    %c1_i32 = arith.constant 1 : i32
    %54 = vector.broadcast %c1_i32 : i32 to vector<8x512xi32>
    %55 = arith.addi %49, %54 : vector<8x512xi32>
    %c64_i32_20 = arith.constant 64 : i32
    %56 = vector.broadcast %c64_i32_20 : i32 to vector<8x512xi32>
    %57 = arith.muli %55, %56 : vector<8x512xi32>
    %58 = arith.cmpi slt, %50, %57 : vector<8x512xi32>
    %59 = arith.andi %53, %58 : vector<8x512xi1>
    %60 = arith.extui %59 : vector<8x512xi1> to vector<8x512xi32>
    %61 = arith.sitofp %60 : vector<8x512xi32> to vector<8x512xf32>
    %cst_21 = arith.constant dense<0.000000e+00> : vector<16x512xf32>
    %62 = tpu.matmul %27, %61, %cst_21 {dimension_numbers = #tpu.dot_dimension_numbers<[1], [0], [0], [1], [0, 0, 1, 1], [], []>} : vector<16x8xf32>, vector<8x512xf32>, vector<16x512xf32> -> vector<16x512xf32>
    %63 = arith.mulf %48, %62 : vector<16x512xf32>
    %64 = arith.truncf %63 : vector<16x512xf32> to vector<16x512xbf16>
    %c0_22 = arith.constant 0 : index
    %c0_23 = arith.constant 0 : index
    %65 = vector.load %arg5[%c0_22, %c0_23] : memref<512x32xbf16, #tpu.memory_space<vmem>>, vector<512x32xbf16>
    %cst_24 = arith.constant dense<0.000000e+00> : vector<16x32xf32>
    %66 = tpu.matmul %64, %65, %cst_24 {dimension_numbers = #tpu.dot_dimension_numbers<[1], [0], [0], [1], [0, 0, 1, 1], [], []>} : vector<16x512xbf16>, vector<512x32xbf16>, vector<16x32xf32> -> vector<16x32xf32>
    %c0_25 = arith.constant 0 : index
    %c0_26 = arith.constant 0 : index
    %67 = vector.load %arg6[%c0_25, %c0_26] : memref<8x32xf32, #tpu.memory_space<vmem>>, vector<8x32xf32>
    %cst_27 = arith.constant dense<0.000000e+00> : vector<16x32xf32>
    %68 = tpu.matmul %27, %67, %cst_27 {dimension_numbers = #tpu.dot_dimension_numbers<[1], [0], [0], [1], [0, 0, 1, 1], [], []>} : vector<16x8xf32>, vector<8x32xf32>, vector<16x32xf32> -> vector<16x32xf32>
    %69 = arith.addf %66, %68 : vector<16x32xf32>
    %c0_28 = arith.constant 0 : index
    %c0_29 = arith.constant 0 : index
    %70 = vector.load %arg7[%c0_28, %c0_29] : memref<16x32xf32, #tpu.memory_space<vmem>>, vector<16x32xf32>
    tpu.vector_store %arg7[%c0_28, %c0_29], %69 {strides = array<i32>} : memref<16x32xf32, #tpu.memory_space<vmem>>, vector<16x32xf32>,
    return
  }
  func.func @transform_0(%arg0: i32) -> (i32, i32) {
    %c0_i32 = arith.constant 0 : i32
    %c0_i32_0 = arith.constant 0 : i32
    return %arg0, %c0_i32 : i32, i32
  }
  func.func @transform_1(%arg0: i32) -> (i32, i32) {
    %c0_i32 = arith.constant 0 : i32
    %c0_i32_0 = arith.constant 0 : i32
    return %arg0, %c0_i32 : i32, i32
  }
  func.func @transform_2(%arg0: i32) -> (i32, i32) {
    %c0_i32 = arith.constant 0 : i32
    %c0_i32_0 = arith.constant 0 : i32
    %c0_i32_1 = arith.constant 0 : i32
    return %c0_i32, %c0_i32_0 : i32, i32
  }
  func.func @transform_3(%arg0: i32) -> (i32, i32) {
    %c0_i32 = arith.constant 0 : i32
    %c0_i32_0 = arith.constant 0 : i32
    %c0_i32_1 = arith.constant 0 : i32
    return %c0_i32, %c0_i32_0 : i32, i32
  }
  func.func @transform_4(%arg0: i32) -> (i32, i32) {
    %c0_i32 = arith.constant 0 : i32
    %c0_i32_0 = arith.constant 0 : i32
    %c0_i32_1 = arith.constant 0 : i32
    return %c0_i32, %c0_i32_0 : i32, i32
  }
  func.func @transform_5(%arg0: i32) -> (i32, i32) {
    %c0_i32 = arith.constant 0 : i32
    %c0_i32_0 = arith.constant 0 : i32
    %c0_i32_1 = arith.constant 0 : i32
    return %c0_i32, %c0_i32_0 : i32, i32
  }
  func.func @transform_6(%arg0: i32) -> (i32, i32) {
    %c0_i32 = arith.constant 0 : i32
    %c0_i32_0 = arith.constant 0 : i32
    return %arg0, %c0_i32 : i32, i32
  }
  func.func @transform_7(%arg0: i32) -> (i32, i32) {
    %c0_i32 = arith.constant 0 : i32
    %c0_i32_0 = arith.constant 0 : i32
    return %arg0, %c0_i32 : i32, i32
  }
}

</mosaic_0001>

<bundles_post_ra>
// kernel: moe_forward.1
= control target key start
LH: loop header
LB: loop body
LE: loop exit
PB: predicated region body
PF: predicated region fallthrough
CT: control target
= control target key end

     0   :  { %vm31_vm0 = vcmask 64512   ;;  %s1469_s0 = inlined_call_operand.vmem [shape: f32[16,32], index: 0, kind: input, shape index: {}]   ;;  %s1470_s1 = inlined_call_operand.vmem [shape: f32[16,8], index: 1, kind: input, shape index: {}]   ;;  %s1471_s2 = inlined_call_operand.vmem [shape: bf16[32,512], index: 2, kind: input, shape index: {}]   ;;  %s1472_s3 = inlined_call_operand.vmem [shape: f32[1,512], index: 3, kind: input, shape index: {}]   ;;  %s1473_s4 = inlined_call_operand.vmem [shape: bf16[512,32], index: 4, kind: input, shape index: {}]   ;;  %s1474_s5 = inlined_call_operand.vmem [shape: f32[8,32], index: 5, kind: input, shape index: {}]   ;;  %s1475_s6 = inlined_call_operand.hbm [shape: f32[16,32], index: 6, kind: output, shape index: {0}]   ;;  %s1476_s7 = inlined_call_operand.vmem [shape: f32[16,8], index: 7, kind: output, shape index: {1}]  }
   0x1   :  { %v30_v0 = vld [vmem:[%s1470_s1 + $0x8] sm:$0xff]  ;;  %v29_v1 = vld [vmem:[%s1470_s1] sm:$0xff] }
   0x2   :  { %v35_v2 = vsel %vm31_vm0, %v30_v0, -inf  ;;  %v32_v3 = vsel %vm31_vm0, %v29_v1, -inf }
   0x3   :  { %36 = vmax.xlane.f32.xlu0 %v35_v2 }
   0x7   :  { %33 = vmax.xlane.f32.xlu0 %v32_v3 }
   0x8   :  { %13 = vsyncpa [#allocation3], 0  ;;  %v1075_v28 = vld [vmem:[%s1471_s2 + $0x4] ss:$16 sps:$4 sm:$0xff]   ;;  %v1077_v29 = vld [vmem:[%s1471_s2] ss:$16 sps:$4 sm:$0xff]   ;;  %v99_v46 = vlaneseq }
   0x9   :  { %v1078_v30 = vld [vmem:[%s1471_s2 + $0xc] ss:$16 sps:$4 sm:$0xff]   ;;  %v1080_v31 = vld [vmem:[%s1471_s2 + $0x8] ss:$16 sps:$4 sm:$0xff]   ;;  %v1081_v32 = vld [vmem:[%s1471_s2 + $0x24] ss:$16 sps:$4 sm:$0xff]   ;;  %163 = vmatprep.subr.bf16.mxu0 %v1075_v28 }
   0xa   :  { %206 = vmatprep.subr.bf16.mxu1 %v1078_v30  ;;  %v1083_v33 = vld [vmem:[%s1471_s2 + $0x20] ss:$16 sps:$4 sm:$0xff]   ;;  %v1084_v34 = vld [vmem:[%s1471_s2 + $0x2c] ss:$16 sps:$4 sm:$0xff]   ;;  %164 = vmatpush1.bf16.msra.mxu0 %v1077_v29  ;;  %v1086_v35 = vld [vmem:[%s1471_s2 + $0x28] ss:$16 sps:$4 sm:$0xff]  }
   0xb   :  { %207 = vmatpush1.bf16.msra.mxu1 %v1080_v31  ;;  %v27_v36 = vld [vmem:[%s1469_s0] sm:$0xff]  ;;  %v28_v37 = vld [vmem:[%s1469_s0 + $0x8] sm:$0xff]  ;;  %165 = vmatprep.subr.bf16.mxu0 %v1081_v32  ;;  %v1171_v38 = vmov 0   ;;  %vm159_vm3 = vcmask 261120   ;;  %v100_v47 = vshrl.u32 %v99_v46, 7  ;;  %v324_v48 = vand.u32 127, %v99_v46 }
   0xc   :  { %208 = vmatprep.subr.bf16.mxu1 %v1084_v34  ;;  %195 = vmatprep.mubr.bf16.mxu0 %v1171_v38  ;;  %v88_v39 = vpack.c.bf16 %v28_v37, %v27_v36  ;;  %v1172_v53 = vmov 1.0   ;;  %v1173_v56 = vmov 0.0   ;;  %v587_v58 = vld [vmem:[%s1474_s5] sm:$0xff]  ;;  %v1089_v28 = vld [vmem:[%s1473_s4 + $0x48] sm:$0xff]   ;;  %v1098_v36 = vld [vmem:[%s1473_s4 + $0xd0] sm:$0xff]  }
   0xd   :  { %238 = vmatprep.mubr.bf16.mxu1 %v1171_v38  ;;  %v333_v49 = vadd.s32 1, %v100_v47  ;;  %v325_v50 = vadd.s32 128, %v324_v48  ;;  %v328_v51 = vmul.u32 64, %v100_v47  ;;  %v327_v54 = vadd.s32 384, %v324_v48  ;;  %v97_v61 = vld [vmem:[%s1472_s3] sm:$0xf] }
   0xe   :  { %166 = vmatpush1.bf16.msra.mxu0 %v1083_v33  ;;  %v326_v55 = vadd.s32 256, %v324_v48  ;;  %v101_v59 = vsub.s32 0, %v100_v47  ;;  %v109_v60 = vsub.s32 2, %v100_v47  ;;  %v105_v62 = vsub.s32 1, %v100_v47  ;;  %v1090_v29 = vld [vmem:[%s1473_s4 + $0xc0] sm:$0xff]   ;;  %v1091_v31 = vld [vmem:[%s1473_s4 + $0x8] sm:$0xff]  }
   0xf   :  { %209 = vmatpush1.bf16.msra.mxu1 %v1086_v35  ;;  %v334_v52 = vmul.u32 64, %v333_v49  ;;  %vm330_vm8 = vcmp.ge.s32.totalorder %v325_v50, %v328_v51  ;;  %vm329_vm11 = vcmp.ge.s32.totalorder %v324_v48, %v328_v51  ;;  %vm332_vm14 = vcmp.ge.s32.totalorder %v327_v54, %v328_v51  ;;  %v1092_v30 = vld [vmem:[%s1473_s4 + $0x80] sm:$0xff]   ;;  %v1094_v32 = vld [vmem:[%s1473_s4 + $0xc8] sm:$0xff]   ;;  %v1093_v33 = vld [vmem:[%s1473_s4 + $0x50] sm:$0xff]  }
  0x10   :  { %v113_v63 = vsub.s32 3, %v100_v47  ;;  %v106_v2 = vrot.slane %v97_v61, %v105_v62  ;;  %v1096_v34 = vld [vmem:[%s1473_s4 + $0x88] sm:$0xff]   ;;  %v1095_v35 = vld [vmem:[%s1473_s4 + $0x10] sm:$0xff]   ;;  %v1097_v37 = vld [vmem:[%s1473_s4 + $0x58] sm:$0xff]  }
  0x11   :  { %967 = vmatmul.mubr.msk.bf16.vlgmr.msra.gmra.mrb[0].mxu0 %vm159_vm3, %v88_v39  ;;  %vm336_vm9 = vcmp.lt.s32.totalorder %v325_v50, %v334_v52  ;;  %vm335_vm12 = vcmp.lt.s32.totalorder %v324_v48, %v334_v52  ;;  %vm338_vm15 = vcmp.lt.s32.totalorder %v327_v54, %v334_v52  ;;  %v1100_v38 = vld [vmem:[%s1473_s4 + $0x90] sm:$0xff]   ;;  %v1107_v46 = vld [vmem:[%s1473_s4 + $0x28] sm:$0xff]   ;;  %v1108_v47 = vld [vmem:[%s1473_s4 + $0xa0] sm:$0xff]  }
  0x12   :  { %968 = vmatmul.mubr.msk.bf16.vlgmr.msra.gmra.mrb[0].mxu1 %vm159_vm3, %v88_v39  ;;  %vm340_vm10 = vmand %vm330_vm8, %vm336_vm9  ;;  %421 = vmatprep.mubr.f32.mxu0 %v1173_v56  ;;  %v114_v3 = vrot.slane %v97_v61, %v113_v63  ;;  %v1099_v39 = vld [vmem:[%s1473_s4 + $0x18] sm:$0xff]   ;;  %v1109_v48 = vld [vmem:[%s1473_s4 + $0x70] sm:$0xff]  }
  0x13   :  { %1067 = vmatprep.subr.msk.mxu1 %vm340_vm10, %v1172_v53  ;;  %vm339_vm13 = vmand %vm329_vm11, %vm335_vm12  ;;  %973 = vmatprep.subr.msk.mxu0 %vm340_vm10, %v1172_v53  ;;  %v1110_v49 = vld [vmem:[%s1473_s4 + $0xe8] sm:$0xff]   ;;  %v1111_v50 = vld [vmem:[%s1473_s4 + $0x30] sm:$0xff]  }
  0x14   :  { %1068 = vmatpush1.msk.msra.mxu1 %vm339_vm13, %v1172_v53  ;;  %974 = vmatpush1.msk.msra.mxu0 %vm339_vm13, %v1172_v53  ;;  %v1115_v54 = vld [vmem:[%s1473_s4 + $0x38] sm:$0xff]  }
  0x15   :  { %427 = vmatprep.mubr.f32.mxu1 %v1173_v56  ;;  %1062 = vmatprep.subr.mxu0 %v587_v58  ;;  %v1118_v57 = vld [vmem:[%s1473_s4 + $0xb8] sm:$0xff]  }
  0x90   :  { %v37_v4 = vpop.xlane.xlu0 %36 }
  0x91   :  { %v39_v5 = vsub.f32 %v30_v0, %v37_v4  ;;  %v102_v0 = vrot.slane %v97_v61, %v101_v59 }
  0x93   :  { %v42_v6 = vmul.f32 1.442695, %v39_v5 }
  0x94   :  { %v34_v7 = vpop.xlane.xlu0 %33 }
  0x95   :  { %1119 = vpow2.f32 %v42_v6  ;;  %v38_v8 = vsub.f32 %v29_v1, %v34_v7  ;;  %v110_v1 = vrot.slane %v97_v61, %v109_v60 }
  0x97   :  { %v40_v9 = vmul.f32 1.442695, %v38_v8 }
  0x99   :  { %1121 = vpow2.f32 %v40_v9 }
  0x9f   :  { %v1120_v10 = vpop.eup %1119 }
  0xa0   :  { %v47_v11 = vsel %vm31_vm0, %v1120_v10, 0.0 }
  0xa1   :  { %48 = vadd.xlane.f32.xlu1 %v47_v11 }
  0xa3   :  { %v1122_v12 = vpop.eup %1121 }
  0xa4   :  { %v44_v13 = vsel %vm31_vm0, %v1122_v12, 0.0 }
  0xa5   :  { %45 = vadd.xlane.f32.xlu1 %v44_v13 }
  0xe4   :  { %v197_v4 = vpop.f32.mrb[0].mxu0 }
  0xe5   :  { %v240_v5 = vpop.f32.mrb[0].mxu1  ;;  %v1285_v6 = vadd.f32 %v197_v4, %v102_v0  ;;  %v199_v7 = vpop.f32.mrb[1].mxu0 }
  0xe6   :  { %v1287_v8 = vadd.f32 %v240_v5, %v110_v1  ;;  %v242_v9 = vpop.f32.mrb[1].mxu1  ;;  %v201_v11 = vpop.f32.mrb[2].mxu0 }
  0xe7   :  { %v244_v13 = vpop.f32.mrb[2].mxu1  ;;  %v257_v60 = vmul.f32 0.044715, %v1285_v6 }
  0xe8   :  { %v259_v61 = vmul.f32 0.044715, %v1287_v8 }
  0xea   :  { %v267_v4 = vmul.f32 %v259_v61, %v1287_v8 }
 0x12e   :  { %v49_v14 = vpop.xlane.xlu1 %48 }
 0x12f   :  { %1123 = vrcp.f32 %v49_v14  ;;  %v1293_v14 = vadd.f32 %v201_v11, %v102_v0 }
 0x132   :  { %v46_v15 = vpop.xlane.xlu1 %45 }
 0x133   :  { %1125 = vrcp.f32 %v46_v15  ;;  %v203_v15 = vpop.f32.mrb[3].mxu0 }
 0x139   :  { %v1124_v16 = vpop.eup %1123 }
 0x13a   :  { %v53_v17 = vmul.f32 %v1124_v16, %v1120_v10  ;;  %v1289_v10 = vadd.f32 %v199_v7, %v106_v2  ;;  %v1295_v16 = vadd.f32 %v244_v13, %v110_v1 }
 0x13c   :  { %v57_v18 = vsel %vm31_vm0, %v53_v17, -inf  ;;  %v258_v63 = vmul.f32 0.044715, %v1289_v10  ;;  %v263_v5 = vmul.f32 0.044715, %v1295_v16 }
 0x13d   :  { %v1126_v19 = vpop.eup %1125  ;;  %58 = vmax.xlane.f32.xlu0 %v57_v18  ;;  %v1297_v18 = vadd.f32 %v203_v15, %v106_v2  ;;  %v265_v2 = vmul.f32 %v257_v60, %v1285_v6 }
 0x13e   :  { %v51_v20 = vmul.f32 %v1126_v19, %v1122_v12  ;;  %v1291_v12 = vadd.f32 %v242_v9, %v114_v3  ;;  %v266_v7 = vmul.f32 %v258_v63, %v1289_v10 }
 0x13f   :  { %v262_v59 = vmul.f32 0.044715, %v1297_v18  ;;  %v273_v15 = vmul.f32 %v265_v2, %v1285_v6 }
 0x140   :  { %v54_v21 = vsel %vm31_vm0, %v51_v20, -inf  ;;  %v260_v0 = vmul.f32 0.044715, %v1291_v12  ;;  %v252_v61 = vmul.f32 0.5, %v1291_v12 }
 0x141   :  { %55 = vmax.xlane.f32.xlu1 %v54_v21  ;;  %v270_v1 = vmul.f32 %v262_v59, %v1297_v18 }
 0x142   :  { %v268_v13 = vmul.f32 %v260_v0, %v1291_v12 }
 0x143   :  { %v278_v11 = vmul.f32 %v270_v1, %v1297_v18 }
 0x1ca   :  { %v59_v22 = vpop.xlane.xlu0 %58 }
 0x1cb   :  { %vm61_vm1 = vcmp.ge.f32.partialorder %v53_v17, %v59_v22 }
 0x1cc   :  { %v63_v23 = vsel %vm61_vm1, -1.0, %v53_v17 }
 0x1cd   :  { %v67_v24 = vsel %vm31_vm0, %v63_v23, -inf }
 0x1ce   :  { %v56_v25 = vpop.xlane.xlu1 %55  ;;  %68 = vmax.xlane.f32.xlu0 %v67_v24  ;;  %v1087_v24 = vld [vmem:[%s1473_s4 + $0x40] sm:$0xff]  }
 0x1cf   :  { %vm60_vm2 = vcmp.ge.f32.partialorder %v51_v20, %v56_v25 }
 0x1d0   :  { %v62_v26 = vsel %vm60_vm2, -1.0, %v51_v20 }
 0x1d1   :  { %v64_v27 = vsel %vm31_vm0, %v62_v26, -inf }
 0x1d2   :  { %65 = vmax.xlane.f32.xlu1 %v64_v27  ;;  %v1088_v27 = vld [vmem:[%s1473_s4] sm:$0xff]  }
 0x25b   :  { %v69_v40 = vpop.xlane.xlu0 %68 }
 0x25c   :  { %vm71_vm4 = vcmp.ge.f32.partialorder %v63_v23, %v69_v40  ;;  %v1102_v40 = vld [vmem:[%s1473_s4 + $0xd8] sm:$0xff]  }
 0x25d   :  { %vm73_vm5 = vmor %vm61_vm1, %vm71_vm4  ;;  %vm337_vm4 = vcmp.lt.s32.totalorder %v326_v55, %v334_v52  ;;  %v1113_v52 = vld [vmem:[%s1473_s4 + $0x78] sm:$0xff]  }
 0x25e   :  { %v1266_v41 = vsel %vm73_vm5, %v53_v17, 0.0  ;;  %vm342_vm1 = vmand %vm332_vm14, %vm338_vm15  ;;  %v246_v17 = vpop.f32.mrb[3].mxu1 }
 0x25f   :  { %v66_v42 = vpop.xlane.xlu1 %65  ;;  %v79_v43 = vsel %vm31_vm0, %v1266_v41, 0.0  ;;  %977 = vmatprep.subr.msk.mxu1 %vm342_vm1, %v1172_v53  ;;  %v1299_v19 = vadd.f32 %v246_v17, %v114_v3 }
 0x260   :  { %vm70_vm6 = vcmp.ge.f32.partialorder %v62_v26, %v66_v42  ;;  %80 = vadd.xlane.f32.xlu0 %v79_v43  ;;  %v1104_v42 = vld [vmem:[%s1473_s4 + $0x98] sm:$0xff]   ;;  %v1103_v43 = vld [vmem:[%s1473_s4 + $0x20] sm:$0xff]  }
 0x261   :  { %vm72_vm7 = vmor %vm60_vm2, %vm70_vm6  ;;  %vm331_vm2 = vcmp.ge.s32.totalorder %v326_v55, %v328_v51  ;;  %v1112_v51 = vld [vmem:[%s1473_s4 + $0xa8] sm:$0xff]   ;;  %v1116_v55 = vld [vmem:[%s1473_s4 + $0xb0] sm:$0xff]   ;;  %v264_v9 = vmul.f32 0.044715, %v1299_v19 }
 0x262   :  { %v1271_v44 = vsel %vm72_vm7, %v51_v20, 0.0  ;;  %vm1275_vm5 = vmand %vm331_vm2, %vm337_vm4 }
 0x263   :  { %v76_v45 = vsel %vm31_vm0, %v1271_v44, 0.0 }
 0x264   :  { %77 = vadd.xlane.f32.xlu1 %v76_v45  ;;  %v1105_v45 = vld [vmem:[%s1473_s4 + $0x68] sm:$0xff]  }
 0x2ed   :  { %v81_v20 = vpop.xlane.xlu0 %80 }
 0x2ee   :  { %1127 = vrcp.f32 %v81_v20  ;;  %v275_v20 = vmul.f32 %v267_v4, %v1287_v8 }
 0x2f1   :  { %v78_v21 = vpop.xlane.xlu1 %77 }
 0x2f2   :  { %1129 = vrcp.f32 %v78_v21  ;;  %v274_v21 = vmul.f32 %v266_v7, %v1289_v10 }
 0x2f8   :  { %v1128_v22 = vpop.eup %1127 }
 0x2f9   :  { %v85_v23 = vmul.f32 %v1128_v22, %v1266_v41  ;;  %v1101_v41 = vld [vmem:[%s1473_s4 + $0x60] sm:$0xff]   ;;  %v271_v22 = vmul.f32 %v263_v5, %v1295_v16 }
 0x2fb   :  { %87 = vst.msk [vmem:[%s1476_s7 + $0x8] sm:$0xff] %vm31_vm0, %v85_v23  ;;  %976 = vmatmul.mubr.msk.f32.vlgmr.msra.gmra.mrb[4].mxu1 %vm31_vm0, %v85_v23 }
 0x2fc   :  { %v1130_v25 = vpop.eup %1129  ;;  %978 = vmatpush1.msk.msra.mxu1 %vm1275_vm5, %v1172_v53  ;;  %498 = vmatprep.mubr.f32.mxu1 %v1173_v56  ;;  %v1114_v53 = vld [vmem:[%s1473_s4 + $0xf0] sm:$0xff]  }
 0x2fd   :  { %v83_v26 = vmul.f32 %v1130_v25, %v1271_v44  ;;  %1018 = vmatprep.subr.bf16.mxu1 %v1087_v24  ;;  %v1106_v44 = vld [vmem:[%s1473_s4 + $0xe0] sm:$0xff]   ;;  %v276_v24 = vmul.f32 %v268_v13, %v1291_v12  ;;  %v272_v25 = vmul.f32 %v264_v9, %v1299_v19  ;;  %v256_v9 = vmul.f32 0.5, %v1299_v19 }
 0x2ff   :  { %86 = vst.msk [vmem:[%s1476_s7] sm:$0xff] %vm31_vm0, %v83_v26  ;;  %975 = vmatmul.mubr.msk.f32.vlgmr.msra.gmra.mrb[4].mxu0 %vm31_vm0, %v83_v26  ;;  %979 = vmatmul.mubr.msk.f32.vlgmr.msra.gmra.mrb[6].mxu1 %vm31_vm0, %v83_v26 }
 0x300   :  { %1064 = vmatprep.mubr.msk.f32.mxu0 %vm31_vm0, %v83_v26  ;;  %504 = vmatprep.mubr.f32.mxu1 %v1173_v56  ;;  %v1117_v56 = vld [vmem:[%s1473_s4 + $0xf8] sm:$0xff]   ;;  %v281_v26 = vadd.f32 %v273_v15, %v1285_v6  ;;  %s1174_s4 = smov [#allocation2]  }
 0x301   :  { %1063 = vmatpush3.msra.mxu0 %v587_v58  ;;  %1019 = vmatpush3.bf16.msra.mxu1 %v1088_v27  ;;  %v261_v58 = vmul.f32 0.044715, %v1293_v14  ;;  %s944_s10 = sshll.u32 %s1174_s4, 4  ;;  %s945_s10 = int_to_ptr.vmem [resolvable:$true] %s944_s10 }
 0x302   :  { %1020 = vmatprep.subr.bf16.mxu1 %v1089_v28  ;;  %1040 = vmatprep.subr.bf16.mxu0 %v1090_v29  ;;  %v283_v28 = vadd.f32 %v275_v20, %v1287_v8  ;;  %v282_v29 = vadd.f32 %v274_v21, %v1289_v10  ;;  %s1147_s11 = scalar_lea.vmem %s945_s10, 256  ;;  %p1152_p1 = scmp.lt.s32.totalorder %s945_s10, %s945_s10 }
 0x303   :  { %980 = vmatmul.mubr.msk.f32.gmra.mrb[8].mxu1 %vm31_vm0, %v85_v23  ;;  %1065 = vmatmul.mubr.msk.f32.vlgmr.msra.gmra.mrb[6].mxu0 %vm31_vm0, %v85_v23  ;;  %v269_v62 = vmul.f32 %v261_v58, %v1293_v14  ;;  %v286_v23 = vadd.f32 %v278_v11, %v1297_v18  ;;  %p1148_p0 = scmp.ne.s32.totalorder %s945_s10, %s1147_s11  ;;  %p1153_p2 = scmp.lt.s32.totalorder %s1147_s11, %s1147_s11 }
 0x304   :  { %1041 = vmatpush3.bf16.msra.mxu0 %v1092_v30  ;;  %v279_v30 = vmul.f32 %v271_v22, %v1295_v16 }
 0x305   :  { %1021 = vmatpush3.bf16.msra.mxu1 %v1091_v31  ;;  %1042 = vmatprep.subr.bf16.mxu0 %v1094_v32  ;;  %v277_v3 = vmul.f32 %v269_v62, %v1293_v14  ;;  %v294_v31 = vmul.f32 0.7978845, %v286_v23  ;;  %v284_v32 = vadd.f32 %v276_v24, %v1291_v12  ;;  %p1154_p3 = por %p1153_p2, %p1152_p1 }
 0x306   :  { %1022 = vmatprep.subr.bf16.mxu1 %v1093_v33  ;;  %v280_v33 = vmul.f32 %v272_v25, %v1299_v19 }
 0x307   :  { %v285_v17 = vadd.f32 %v277_v3, %v1293_v14  ;;  %p1155_p4 = pnand %p1154_p3, %p1148_p0 }
 0x308   :  { %1043 = vmatpush3.bf16.msra.mxu0 %v1096_v34  ;;  %v289_v34 = vmul.f32 0.7978845, %v281_v26 }
 0x309   :  { %1023 = vmatpush3.bf16.msra.mxu1 %v1095_v35  ;;  %1044 = vmatprep.subr.bf16.mxu0 %v1098_v36  ;;  %v293_v27 = vmul.f32 0.7978845, %v285_v17  ;;  %v291_v35 = vmul.f32 0.7978845, %v283_v28  ;;  %v290_v36 = vmul.f32 0.7978845, %v282_v29 }
 0x30a   :  { %1024 = vmatprep.subr.bf16.mxu1 %v1097_v37  ;;  %v287_v37 = vadd.f32 %v279_v30, %v1295_v16 }
 0x30b   :  { %1131 = vtanh.f32 %v293_v27 }
 0x30c   :  { %1045 = vmatpush3.bf16.msra.mxu0 %v1100_v38  ;;  %1133 = vtanh.f32 %v294_v31  ;;  %v292_v38 = vmul.f32 0.7978845, %v284_v32 }
 0x30d   :  { %1025 = vmatpush3.bf16.msra.mxu1 %v1099_v39  ;;  %1046 = vmatprep.subr.bf16.mxu0 %v1102_v40  ;;  %v288_v39 = vadd.f32 %v280_v33, %v1299_v19  ;;  %1135 = vtanh.f32 %v289_v34  ;;  %v295_v40 = vmul.f32 0.7978845, %v287_v37 }
 0x30e   :  { %1026 = vmatprep.subr.bf16.mxu1 %v1101_v41  ;;  %1137 = vtanh.f32 %v291_v35 }
 0x30f   :  { %1139 = vtanh.f32 %v290_v36  ;;  %v296_v41 = vmul.f32 0.7978845, %v288_v39 }
 0x310   :  { %1047 = vmatpush3.bf16.msra.mxu0 %v1104_v42  ;;  %1141 = vtanh.f32 %v292_v38 }
 0x311   :  { %1027 = vmatpush3.bf16.msra.mxu1 %v1103_v43  ;;  %1048 = vmatprep.subr.bf16.mxu0 %v1106_v44  ;;  %1143 = vtanh.f32 %v295_v40 }
 0x312   :  { %1028 = vmatprep.subr.bf16.mxu1 %v1105_v45  ;;  %1145 = vtanh.f32 %v296_v41  ;;  %v253_v45 = vmul.f32 0.5, %v1293_v14 }
 0x314   :  { %1049 = vmatpush3.bf16.msra.mxu0 %v1108_v47 }
 0x315   :  { %1029 = vmatpush3.bf16.msra.mxu1 %v1107_v46  ;;  %1050 = vmatprep.subr.bf16.mxu0 %v1110_v49  ;;  %v1132_v42 = vpop.eup %1131  ;;  %v254_v49 = vmul.f32 0.5, %v1297_v18 }
 0x316   :  { %1030 = vmatprep.subr.bf16.mxu1 %v1109_v48  ;;  %v1134_v43 = vpop.eup %1133  ;;  %v309_v46 = vadd.f32 1.0, %v1132_v42 }
 0x317   :  { %v1136_v44 = vpop.eup %1135 }
 0x318   :  { %1051 = vmatpush3.bf16.msra.mxu0 %v1112_v51  ;;  %v1138_v47 = vpop.eup %1137 }
 0x319   :  { %1031 = vmatpush3.bf16.msra.mxu1 %v1111_v50  ;;  %1052 = vmatprep.subr.bf16.mxu0 %v1114_v53  ;;  %v1140_v48 = vpop.eup %1139  ;;  %v310_v50 = vadd.f32 1.0, %v1134_v43  ;;  %v249_v53 = vmul.f32 0.5, %v1285_v6  ;;  %v255_v6 = vmul.f32 0.5, %v1295_v16 }
 0x31a   :  { %1032 = vmatprep.subr.bf16.mxu1 %v1113_v52  ;;  %v1142_v51 = vpop.eup %1141  ;;  %v317_v52 = vmul.f32 %v309_v46, %v253_v45  ;;  %v306_v14 = vadd.f32 1.0, %v1140_v48 }
 0x31b   :  { %v1144_v58 = vpop.eup %1143  ;;  %v318_v60 = vmul.f32 %v310_v50, %v254_v49  ;;  %v308_v62 = vadd.f32 1.0, %v1142_v51 }
 0x31c   :  { %1053 = vmatpush3.bf16.msra.mxu0 %v1116_v55  ;;  %v251_v55 = vmul.f32 0.5, %v1287_v8  ;;  %v1146_v63 = vpop.eup %1145  ;;  %v311_v4 = vadd.f32 1.0, %v1144_v58 }
 0x31d   :  { %1033 = vmatpush3.bf16.msra.mxu1 %v1115_v54  ;;  %1054 = vmatprep.subr.bf16.mxu0 %v1117_v56  ;;  %v305_v54 = vadd.f32 1.0, %v1136_v44  ;;  %v307_v56 = vadd.f32 1.0, %v1138_v47  ;;  %v312_v11 = vadd.f32 1.0, %v1146_v63 }
 0x31e   :  { %v319_v23 = vmul.f32 %v311_v4, %v255_v6 }
 0x31f   :  { %v313_v2 = vmul.f32 %v305_v54, %v249_v53  ;;  %v315_v3 = vmul.f32 %v307_v56, %v251_v55  ;;  %v320_v16 = vmul.f32 %v312_v11, %v256_v9 }
 0x320   :  { %1055 = vmatpush3.bf16.msra.mxu0 %v1118_v57  ;;  %v250_v57 = vmul.f32 0.5, %v1289_v10  ;;  %v316_v10 = vmul.f32 %v308_v62, %v252_v61 }
 0x322   :  { %v314_v7 = vmul.f32 %v306_v14, %v250_v57 }
 0x3ce   :  { %v429_v59 = vpop.f32.mrb[4].mxu1 }
 0x3cf   :  { %v515_v18 = vmul.f32 %v429_v59, %v317_v52  ;;  %v431_v0 = vpop.f32.mrb[5].mxu1 }
 0x3d0   :  { %v516_v1 = vmul.f32 %v431_v0, %v318_v60 }
 0x3d2   :  { %v423_v8 = vpop.f32.mrb[4].mxu0  ;;  %v500_v5 = vpop.f32.mrb[6].mxu1 }
 0x3d3   :  { %v511_v13 = vmul.f32 %v423_v8, %v313_v2  ;;  %v513_v15 = vmul.f32 %v500_v5, %v315_v3  ;;  %v425_v12 = vpop.f32.mrb[5].mxu0  ;;  %v502_v17 = vpop.f32.mrb[7].mxu1 }
 0x3d4   :  { %v512_v20 = vmul.f32 %v425_v12, %v314_v7  ;;  %v514_v21 = vmul.f32 %v502_v17, %v316_v10 }
 0x3d5   :  { %v519_v22 = vpack.c.bf16 %v515_v18, %v511_v13 }
 0x3d6   :  { %v520_v24 = vpack.c.bf16 %v516_v1, %v512_v20  ;;  %v506_v25 = vpop.f32.mrb[8].mxu1  ;;  %v1066_v26 = vpop.f32.mrb[6].mxu0 }
 0x3d7   :  { %v517_v27 = vmul.f32 %v506_v25, %v319_v23  ;;  %v508_v28 = vpop.f32.mrb[9].mxu1  ;;  %v654_v29 = vpop.f32.mrb[7].mxu0 }
 0x3d8   :  { %v518_v30 = vmul.f32 %v508_v28, %v320_v16  ;;  %887 = vmatprep.mubr.bf16.mxu1 %v520_v24 }
 0x3d9   :  { %v521_v31 = vpack.c.bf16 %v517_v27, %v513_v15  ;;  %888 = vmatmul.mubr.bf16.vlgmr.msra.gmra.mrb[12].mxu1 %v519_v22 }
 0x3da   :  { %v522_v19 = vpack.c.bf16 %v518_v30, %v514_v21 }
 0x3dc   :  { %928 = vmatprep.mubr.bf16.mxu0 %v522_v19 }
 0x3dd   :  { %929 = vmatmul.mubr.bf16.vlgmr.msra.gmra.mrb[8].mxu0 %v521_v31 }
 0x4ac   :  { %v1034_v32 = vpop.f32.mrb[12].mxu1 }
 0x4ad   :  { %v1035_v33 = vpop.f32.mrb[13].mxu1 }
 0x4ae   :  { %v1036_v34 = vadd.f32 %v1035_v33, %v1034_v32  ;;  %v1037_v35 = vpop.f32.mrb[14].mxu1 }
 0x4af   :  { %v1038_v36 = vpop.f32.mrb[15].mxu1 }
 0x4b0   :  { %v890_v37 = vadd.f32 %v1036_v34, %v654_v29  ;;  %v1039_v38 = vadd.f32 %v1038_v36, %v1037_v35  ;;  %v1056_v39 = vpop.f32.mrb[8].mxu0 }
 0x4b1   :  { %v1057_v40 = vpop.f32.mrb[9].mxu0 }
 0x4b2   :  { %v893_v41 = vadd.f32 %v1066_v26, %v1039_v38  ;;  %v1058_v42 = vadd.f32 %v1057_v40, %v1056_v39  ;;  %v1059_v43 = vpop.f32.mrb[10].mxu0 }
 0x4b3   :  { %v1060_v44 = vpop.f32.mrb[11].mxu0 }
 0x4b4   :  { %v931_v45 = vadd.f32 %v1058_v42, %v890_v37  ;;  %v1061_v46 = vadd.f32 %v1060_v44, %v1059_v43 }
 0x4b6   :  { %937 = vst.msk [vmem:[#allocation2] sm:$0xff] %vm159_vm3, %v931_v45  ;;  %v934_v47 = vadd.f32 %v1061_v46, %v893_v41 }
 0x4b8   :  { %938 = vst.msk [vmem:[#allocation2 + $0x8] sm:$0xff] %vm159_vm3, %v934_v47 }
 0x4b9   :  { %1158 = shalt.err (!%p1155_p4)
}
 0x4ba   :  { %s1159_s14 = scalar_lea.hbm %s1475_s6, 256 }
 0x4bb   :  { %p1160_p5 = scmp.ne.s32.totalorder %s1475_s6, %s1159_s14  ;;  %p1163_p6 = scmp.lt.u32.totalorder %s1159_s14, %s1475_s6 }
 0x4bd   :  { %p1165_p7 = pnand %p1163_p6, %p1160_p5 }
 0x4bf   :  { %1168 = shalt.err (!%p1165_p7)
}
 0x4c0   :  { %s1175_s18 = smov 128   ;;  %s1176_s19 = smov 8  }
 0x4c1   :  { %950 = dma.vmem_to_hbm [thread:$0]  %s945_s10, 256, %s1475_s6, [#allocation3], %s1175_s18, %s1175_s18, %s1176_s19  }
 0x4c2   :  { %1169 = dma.done.wait [#allocation3], 256  }
 0x4c3   :  { %1170 = vsyncadd [#allocation3], 4294967040 }
 0x4c4   :  { %958 = vsyncpa [#allocation3], 1 }

</bundles_post_ra>
